<compile_context>
chip_gen: v5e
topology: v5e:2x2
jax: 0.10.0
libtpu: 0.0.40
codegen_flags: <defaults>
</compile_context>

<pallas_src>
import jax
import jax.numpy as jnp
from jax.experimental import pallas as pl
from jax.experimental.pallas import tpu as pltpu

_LANES = 128


def _conv1x1_tanh_kernel(w_ref, b_ref, x_ref, o_ref):
    # w_ref, b_ref: (Cout,) f32 scalars resident in SMEM.
    # x_ref: (1, TR, 128) input pixel slab (Cin == 1), VMEM.
    # o_ref: (1, Cout, TR, 128) output slab (NCHW-compatible), VMEM.
    x = x_ref[0]                              # (TR, 128) f32, loaded once
    cout = o_ref.shape[1]
    for c in range(cout):                     # Cout == 3: static unroll, VPU FMA + EUP tanh
        y = jnp.tanh(w_ref[c] * x + b_ref[c])
        o_ref[0, c, :, :] = y.astype(o_ref.dtype)


def conv1x1_tanh(x_nchw, weight, bias, *, tile_rows=512):
    """x_nchw: (N, 1, H, W) f32; weight: (Cout, 1, 1, 1); bias: (Cout,)."""
    N, Cin, H, W = x_nchw.shape
    assert Cin == 1, "kernel specialised for Conv2d(1, Cout, 1)"
    Cout = weight.shape[0]
    HW = H * W

    # Lane/sublane-dense pixel slab: each image's H*W pixels -> (rows, 128).
    rows = (HW + _LANES - 1) // _LANES
    tr = min(tile_rows, rows)                     # rows per grid step
    rows_pad = ((rows + tr - 1) // tr) * tr       # pad rows to a tile multiple
    p_pad = rows_pad * _LANES

    x_flat = x_nchw.reshape(N, HW)
    if p_pad != HW:
        x_flat = jnp.pad(x_flat, ((0, 0), (0, p_pad - HW)))
    x_slab = x_flat.reshape(N, rows_pad, _LANES)  # (N, rows_pad, 128)

    w_vec = weight.reshape(Cout).astype(jnp.float32)  # (Cout,) scalars
    b_vec = bias.reshape(Cout).astype(jnp.float32)    # (Cout,) scalars

    grid = (N, rows_pad // tr)

    out_slab = pl.pallas_call(
        _conv1x1_tanh_kernel,
        out_shape=jax.ShapeDtypeStruct((N, Cout, rows_pad, _LANES), x_nchw.dtype),
        grid=grid,
        in_specs=[
            pl.BlockSpec(memory_space=pltpu.MemorySpace.SMEM),   # weight (3 scalars)
            pl.BlockSpec(memory_space=pltpu.MemorySpace.SMEM),   # bias   (3 scalars)
            pl.BlockSpec((1, tr, _LANES), lambda n, t: (n, t, 0)),
        ],
        out_specs=pl.BlockSpec((1, Cout, tr, _LANES), lambda n, t: (n, 0, t, 0)),
        compiler_params=pltpu.CompilerParams(
            dimension_semantics=("parallel", "parallel"),
        ),
    )(w_vec, b_vec, x_slab)

    # Free contiguous reshape back to NCHW (no transpose pass).
    out = out_slab.reshape(N, Cout, p_pad)[:, :, :HW].reshape(N, Cout, H, W)
    return out


if __name__ == "__main__":
    key = jax.random.PRNGKey(0)
    kx, kw, kb = jax.random.split(key, 3)

    # Small shapes consistent with Conv2d(1, 3, 1): batch=2, Cin=1, 16x16.
    N, Cin, Cout, H, W = 2, 1, 3, 16, 16
    x = jax.random.normal(kx, (N, Cin, H, W), dtype=jnp.float32)

    # Deterministic parameters (same shapes as the PyTorch module).
    weight = jax.random.normal(kw, (Cout, Cin, 1, 1), dtype=jnp.float32) * 0.5
    bias = jax.random.normal(kb, (Cout,), dtype=jnp.float32) * 0.1

    out = conv1x1_tanh(x, weight, bias)
    jax.block_until_ready(out)

    # Cross-check against a plain-JAX reference of the same math.
    ref = jnp.tanh(
        jnp.einsum("nihw,oi->nohw", x, weight.reshape(Cout, Cin))
        + bias.reshape(1, Cout, 1, 1)
    )
    assert out.shape == (N, Cout, H, W)
    assert jnp.allclose(out, ref, atol=1e-5, rtol=1e-5)

    print("KERNEL_OK")
</pallas_src>

<mosaic_0001>
module attributes {stable_mosaic.version = 11 : i64} {
  func.func @_conv1x1_tanh_kernel(%arg0: i32, %arg1: i32, %arg2: memref<3xf32, #tpu.memory_space<smem>>, %arg3: memref<3xf32, #tpu.memory_space<smem>>, %arg4: memref<1x2x128xf32, #tpu.memory_space<vmem>>, %arg5: memref<1x3x2x128xf32, #tpu.memory_space<vmem>>) attributes {dimension_semantics = [#tpu.dimension_semantics<parallel>, #tpu.dimension_semantics<parallel>], iteration_bounds = array<i64: 2, 1>, scalar_prefetch = 0 : i64, scratch_operands = 0 : i64, tpu.core_type = #tpu.core_type<tc>, window_params = [{transform_indices = @transform_0, window_bounds = array<i64: 3>}, {transform_indices = @transform_1, window_bounds = array<i64: 3>}, {transform_indices = @transform_2, window_bounds = array<i64: 1, 2, 128>}, {transform_indices = @transform_3, window_bounds = array<i64: 1, 3, 2, 128>}]} {
    %c0 = arith.constant 0 : index
    %c0_0 = arith.constant 0 : index
    %c0_1 = arith.constant 0 : index
    %0 = vector.load %arg4[%c0, %c0_0, %c0_1] : memref<1x2x128xf32, #tpu.memory_space<vmem>>, vector<1x2x128xf32>
    %1 = vector.shape_cast %0 : vector<1x2x128xf32> to vector<2x128xf32>
    %c0_2 = arith.constant 0 : index
    %2 = memref.load %arg2[%c0_2] : memref<3xf32, #tpu.memory_space<smem>>
    %3 = vector.broadcast %2 : f32 to vector<2x128xf32>
    %4 = arith.mulf %3, %1 : vector<2x128xf32>
    %c0_3 = arith.constant 0 : index
    %5 = memref.load %arg3[%c0_3] : memref<3xf32, #tpu.memory_space<smem>>
    %6 = vector.broadcast %5 : f32 to vector<2x128xf32>
    %7 = arith.addf %4, %6 : vector<2x128xf32>
    %8 = math.tanh %7 : vector<2x128xf32>
    %c0_4 = arith.constant 0 : index
    %c0_5 = arith.constant 0 : index
    %c0_6 = arith.constant 0 : index
    %c0_7 = arith.constant 0 : index
    %9 = vector.load %arg5[%c0_4, %c0_5, %c0_6, %c0_7] : memref<1x3x2x128xf32, #tpu.memory_space<vmem>>, vector<1x1x2x128xf32>
    %10 = vector.shape_cast %9 : vector<1x1x2x128xf32> to vector<2x128xf32>
    %11 = vector.shape_cast %8 : vector<2x128xf32> to vector<1x1x2x128xf32>
    tpu.vector_store %arg5[%c0_4, %c0_5, %c0_6, %c0_7], %11 {strides = array<i32>} : memref<1x3x2x128xf32, #tpu.memory_space<vmem>>, vector<1x1x2x128xf32>,
    %c1 = arith.constant 1 : index
    %12 = memref.load %arg2[%c1] : memref<3xf32, #tpu.memory_space<smem>>
    %13 = vector.broadcast %12 : f32 to vector<2x128xf32>
    %14 = arith.mulf %13, %1 : vector<2x128xf32>
    %c1_8 = arith.constant 1 : index
    %15 = memref.load %arg3[%c1_8] : memref<3xf32, #tpu.memory_space<smem>>
    %16 = vector.broadcast %15 : f32 to vector<2x128xf32>
    %17 = arith.addf %14, %16 : vector<2x128xf32>
    %18 = math.tanh %17 : vector<2x128xf32>
    %c0_9 = arith.constant 0 : index
    %c1_10 = arith.constant 1 : index
    %c0_11 = arith.constant 0 : index
    %c0_12 = arith.constant 0 : index
    %19 = vector.load %arg5[%c0_9, %c1_10, %c0_11, %c0_12] : memref<1x3x2x128xf32, #tpu.memory_space<vmem>>, vector<1x1x2x128xf32>
    %20 = vector.shape_cast %19 : vector<1x1x2x128xf32> to vector<2x128xf32>
    %21 = vector.shape_cast %18 : vector<2x128xf32> to vector<1x1x2x128xf32>
    tpu.vector_store %arg5[%c0_9, %c1_10, %c0_11, %c0_12], %21 {strides = array<i32>} : memref<1x3x2x128xf32, #tpu.memory_space<vmem>>, vector<1x1x2x128xf32>,
    %c2 = arith.constant 2 : index
    %22 = memref.load %arg2[%c2] : memref<3xf32, #tpu.memory_space<smem>>
    %23 = vector.broadcast %22 : f32 to vector<2x128xf32>
    %24 = arith.mulf %23, %1 : vector<2x128xf32>
    %c2_13 = arith.constant 2 : index
    %25 = memref.load %arg3[%c2_13] : memref<3xf32, #tpu.memory_space<smem>>
    %26 = vector.broadcast %25 : f32 to vector<2x128xf32>
    %27 = arith.addf %24, %26 : vector<2x128xf32>
    %28 = math.tanh %27 : vector<2x128xf32>
    %c0_14 = arith.constant 0 : index
    %c2_15 = arith.constant 2 : index
    %c0_16 = arith.constant 0 : index
    %c0_17 = arith.constant 0 : index
    %29 = vector.load %arg5[%c0_14, %c2_15, %c0_16, %c0_17] : memref<1x3x2x128xf32, #tpu.memory_space<vmem>>, vector<1x1x2x128xf32>
    %30 = vector.shape_cast %29 : vector<1x1x2x128xf32> to vector<2x128xf32>
    %31 = vector.shape_cast %28 : vector<2x128xf32> to vector<1x1x2x128xf32>
    tpu.vector_store %arg5[%c0_14, %c2_15, %c0_16, %c0_17], %31 {strides = array<i32>} : memref<1x3x2x128xf32, #tpu.memory_space<vmem>>, vector<1x1x2x128xf32>,
    return
  }
  func.func @transform_0(%arg0: i32, %arg1: i32) -> i32 {
    %c0_i32 = arith.constant 0 : i32
    %c0_i32_0 = arith.constant 0 : i32
    return %c0_i32 : i32
  }
  func.func @transform_1(%arg0: i32, %arg1: i32) -> i32 {
    %c0_i32 = arith.constant 0 : i32
    %c0_i32_0 = arith.constant 0 : i32
    return %c0_i32 : i32
  }
  func.func @transform_2(%arg0: i32, %arg1: i32) -> (i32, i32, i32) {
    %c0_i32 = arith.constant 0 : i32
    %c0_i32_0 = arith.constant 0 : i32
    return %arg0, %arg1, %c0_i32 : i32, i32, i32
  }
  func.func @transform_3(%arg0: i32, %arg1: i32) -> (i32, i32, i32, i32) {
    %c0_i32 = arith.constant 0 : i32
    %c0_i32_0 = arith.constant 0 : i32
    %c0_i32_1 = arith.constant 0 : i32
    return %arg0, %c0_i32, %arg1, %c0_i32_0 : i32, i32, i32, i32
  }
}

</mosaic_0001>

<bundles_post_ra>
// kernel: tpu_custom_call.1
= control target key start
LH: loop header
LB: loop body
LE: loop exit
PB: predicated region body
PF: predicated region fallthrough
CT: control target
= control target key end

     0   :  { %8 = vsyncpa [#allocation5], 0  ;;  %s819_s0 = inlined_call_operand.hbm [shape: f32[3], index: 0, kind: input, shape index: {}]   ;;  %s820_s1 = inlined_call_operand.hbm [shape: f32[3], index: 1, kind: input, shape index: {}]   ;;  %s821_s2 = inlined_call_operand.hbm [shape: f32[2,2,128], index: 2, kind: input, shape index: {}]   ;;  %s822_s3 = inlined_call_operand.hbm [shape: f32[2,3,2,128], index: 3, kind: output, shape index: {}]  }
   0x1   :  { %9 = vsyncpa [#allocation7], 0 }
   0x2   :  { %10 = vsyncpa [#allocation3], 0 }
   0x3   :  { %12 = vsyncpa [#allocation3 + $0x1], 0 }
   0x4   :  { %13 = vsyncpa [#allocation4], 0 }
   0x5   :  { %15 = vsyncpa [#allocation4 + $0x1], 0  ;;  %s672_s12 = smov 0   ;;  %s674_s13 = smov 0  }
   0x6   :  { %s676_s14 = smov 0   ;;  %s678_s15 = smov 0  }
   0x7   :  { %s680_s16 = smov 0   ;;  %s682_s17 = smov 0  }
   0x8 LB: > { %s382_s18 = sadd.s32 4294967295, %s646_s17   ;;  %s383_s19 = sadd.s32 4294967294, %s646_s17   ;;  %s646_s17 = sphi %s682_s17, %s21_s17   ;;  %s642_s16 = sphi %s680_s16, %s832_s16   ;;  %s638_s15 = sphi %s678_s15, %s831_s15   ;;  %s634_s14 = sphi %s676_s14, %s830_s14   ;;  %s630_s13 = sphi %s674_s13, %s829_s13   ;;  %s626_s12 = sphi %s672_s12, %s828_s12  }
   0x9   : > { %p97_p0 = scmp.ne.s32.totalorder %s630_s13, %s626_s12  ;;  %p706_p1 = scmp.eq.s32.totalorder %s382_s18, 0 }
   0xa   : > { %p129_p2 = scmp.eq.s32.totalorder %s383_s19, 1  ;;  %p384_p4 = scmp.ge.s32.totalorder %s646_s17, 1 }
   0xb   : > { %p712_p3 = por %p706_p1, %p97_p0  ;;  %p136_p6 = scmp.lt.s32.totalorder %s646_s17, 3 }
   0xc   : > { %p717_p5 = por %p129_p2, %p97_p0  ;;  %s148_s25 = sshll.u32 %s819_s0, 4  ;;  %s149_s25 = int_to_ptr.hbm [resolvable:$true] %s148_s25 }
   0xd   : > { %p725_p7 = pnand %p384_p4, %p136_p6  ;;  %p387_p8 = scmp.ge.s32.totalorder %s646_s17, 2 }
   0xe   : > { %s158_s29 = sshll.u32 %s820_s1, 4  ;;  %s648_s30 = smov [#allocation2]   ;;  %s159_s29 = int_to_ptr.hbm [resolvable:$true] %s158_s29 }
   0xf   : > { %p417_p9 = pneg %p725_p7  ;;  %s649_s4 = smov [#allocation6]  }
  0x10   : > { %p123_p11 = scmp.eq.s32.totalorder %s382_s18, 1  ;;  %s33_s5 = sadd.s32 1, %s642_s16 }
  0x11   : > { %p418_p10 = pnand %p417_p9, %p706_p1  ;;  %p35_p12 = scmp.ge.s32.totalorder %s33_s5, 2 }
  0x12   : > { %s84_s6 = sadd.s32 1, %s634_s14  ;;  %p91_p13 = scmp.ne.s32.totalorder %s634_s14, %s630_s13 }
  0x13   : > { %420 = dma.hbm_to_smem (!%p418_p10), %s149_s25, 16, %s648_s30, [#allocation5]  }
  0x14   : > { %423 = dma.hbm_to_smem (!%p418_p10), %s159_s29, 16, %s649_s4, [#allocation7]  }
  0x15   : > { %p92_p0 = scmp.eq.s32.totalorder %s646_s17, 0  ;;  %s834_s5 = smov (%p35_p12, %s33_s5), 0 }
  0x16   : > { %p744_p2 = por %p123_p11, %p91_p13  ;;  %p434_p4 = scmp.lt.s32.totalorder %s646_s17, 2 }
  0x17   : > { %s79_s8 = ssub.s32 %s642_s16, %s834_s5  ;;  %s169_s9 = sand.u32 1, %s634_s14  }
  0x18   : > { %p82_p6 = scmp.eq.s32.totalorder %s79_s8, 0  ;;  %p93_p9 = por %p92_p0, %p91_p13 }
  0x19   : > { %s388_s10 = sshll.u32 %s169_s9, 1  ;;  %s389_s11 = sshll.u32 %s642_s16, 1 }
  0x1a   : > { %s754_s18 = scalar_select %p82_p6, %s634_s14, %s84_s6  }
  0x1b   : > { %s178_s24 = scalar_lea.hbm %s821_s2, %s389_s11  ;;  %s173_s27 = scalar_lea.vmem [#allocation8], %s388_s10 }
  0x1c   : > { %s180_s25 = sshll.u32 %s178_s24, 4  ;;  %s182_s28 = sshll.u32 %s173_s27, 4  ;;  %s181_s25 = int_to_ptr.hbm [resolvable:$true] %s180_s25  ;;  %s183_s28 = int_to_ptr.vmem [resolvable:$true] %s182_s28 }
  0x1d   : > { %p425_p10 = pnand %p434_p4, %p93_p9  ;;  %s170_s29 = scalar_lea.sflag [#allocation3], %s169_s9 }
  0x1e   : > { %191 = sbr.rel (%p725_p7) target bundleno = 70 (0x46), region = 32 }
  0x1f   : > { %427 = dma.hbm_to_vmem [thread:$0]  (!%p425_p10), %s181_s25, 32, %s183_s28, %s170_s29  }
  0x23   : > { %609 = dma.done.wait (%p706_p1), [#allocation5], 16  }
  0x24   : > { %611 = vsyncadd (%p706_p1), [#allocation5], 4294967280 }
  0x25   : > { %613 = dma.done.wait (%p706_p1), [#allocation7], 16  }
  0x26   : > { %615 = vsyncadd (%p706_p1), [#allocation7], 4294967280  ;;  %s772_s30 = sand.u32 1, %s630_s13  }
  0x27   : > { %s393_s26 = sshll.u32 %s772_s30, 1  ;;  %s204_s4 = scalar_lea.sflag [#allocation3], %s772_s30 }
  0x28   : > { %s207_s6 = scalar_lea.vmem [#allocation8], %s393_s26 }
  0x29   : > { %617 = dma.done.wait (%p712_p3), %s204_s4, 32  }
  0x2a   : > { %619 = vsyncadd (%p712_p3), %s204_s4, 4294967264 }
  0x2b   : > { %213 = sfence }
  0x2c   : > { %s233_s8 = sld [smem:[#allocation2]]  ;;  %v232_v0 = vld [vmem:[%s207_s6] sm:$0x3]  ;;  %s403_s23 = smul.u32 6, %s772_s30 }
  0x2d   : > { %s236_s20 = sld [smem:[#allocation6]]  ;;  %s404_s21 = smul.u32 6, %s638_s15 }
  0x2e   : > { %s394_s9 = sld [smem:[#allocation2 + $0x1]]  ;;  %s231_s28 = scalar_lea.vmem [#allocation9], %s403_s23 }
  0x2f   : > { %s395_s10 = sld [smem:[#allocation6 + $0x1]]  ;;  %s272_s27 = scalar_lea.hbm %s822_s3, %s404_s21 }
  0x30   : > { %s397_s11 = sld [smem:[#allocation2 + $0x2]]  ;;  %s273_s29 = sshll.u32 %s231_s28, 4  ;;  %s274_s29 = int_to_ptr.vmem [resolvable:$true] %s273_s29 }
  0x31   : > { %s398_s19 = sld [smem:[#allocation6 + $0x2]]  ;;  %s275_s26 = sshll.u32 %s272_s27, 4  ;;  %s276_s26 = int_to_ptr.hbm [resolvable:$true] %s275_s26 }
  0x32   : > { %v234_v1 = vstv %s233_s8  ;;  %s260_s15 = scalar_lea.sflag [#allocation4], %s772_s30  ;;  %s570_s4 = sshra.s32 %s276_s26, 4  ;;  %s571_s4 = int_to_ptr.hbm [resolvable:$true] %s570_s4 }
  0x33   : > { %v235_v2 = vmul.f32 %v234_v1, %v232_v0  ;;  %v237_v3 = vstv %s236_s20  ;;  %s572_s6 = scalar_lea.hbm %s571_s4, 6  ;;  %p577_p11 = scmp.lt.s32.totalorder %s571_s4, %s822_s3 }
  0x34   : > { %v242_v4 = vstv %s394_s9  ;;  %p573_p1 = scmp.ne.s32.totalorder %s571_s4, %s572_s6  ;;  %s576_s9 = scalar_lea.hbm %s822_s3, 12 }
  0x35   : > { %v238_v5 = vadd.f32 %v237_v3, %v235_v2  ;;  %v243_v6 = vmul.f32 %v242_v4, %v232_v0  ;;  %v245_v7 = vstv %s395_s10  ;;  %p578_p12 = scmp.lt.s32.totalorder %s576_s9, %s572_s6 }
  0x36   : > { %v251_v8 = vstv %s397_s11  ;;  %p574_p3 = pnand %p573_p1, %p744_p2 }
  0x37   : > { %490 = vtanh.f32 %v238_v5  ;;  %v246_v9 = vadd.f32 %v245_v7, %v243_v6  ;;  %v252_v10 = vmul.f32 %v251_v8, %v232_v0  ;;  %v254_v11 = vstv %s398_s19  ;;  %p579_p13 = por %p578_p12, %p577_p11 }
  0x38   : > { %p575_p7 = pneg %p574_p3 }
  0x39   : > { %492 = vtanh.f32 %v246_v9  ;;  %v255_v12 = vadd.f32 %v254_v11, %v252_v10 }
  0x3a   : > { %p580_p0 = pnand %p579_p13, %p575_p7 }
  0x3b   : > { %494 = vtanh.f32 %v255_v12 }
  0x3d   : > { %v491_v13 = vpop.eup %490 }
  0x3e   : > { %240 = vst [vmem:[%s231_s28] sm:$0x3] %v491_v13 }
  0x3f   : > { %v493_v14 = vpop.eup %492 }
  0x40   : > { %396 = vst [vmem:[%s231_s28 + $0x2] sm:$0x3] %v493_v14 }
  0x41   : > { %v495_v15 = vpop.eup %494 }
  0x42   : > { %399 = vst [vmem:[%s231_s28 + $0x4] sm:$0x3] %v495_v15 }
  0x43   : > { %583 = shalt.err (!%p580_p0)
}
  0x44   : > { %s650_s30 = smov 32   ;;  %s651_s19 = smov 2  }
  0x45   : > { %415 = dma.vmem_to_hbm [thread:$0]  (%p744_p2), %s274_s29, 96, %s276_s26, %s260_s15, %s650_s30, %s650_s30, %s651_s19  }
  0x46 PF: > { %s290_s23 = sand.u32 1, %s626_s12   ;;  %p429_p4 = pnand %p387_p8, %p717_p5 }
  0x47   : > { %s291_s21 = scalar_lea.sflag [#allocation4], %s290_s23 }
  0x48   : > { %p430_p6 = pneg %p429_p4 }
  0x4a   : > { %621 = dma.done.wait (%p430_p6), %s291_s21, 96  }
  0x4b   : > { %623 = vsyncadd (%p430_p6), %s291_s21, 4294967200  ;;  %s21_s17 = sadd.s32 1, %s646_s17   ;;  %s828_s12 = smov %s630_s13 }
  0x4c   : > { %p18_p9 = scmp.ge.s32.totalorder %s21_s17, 4   ;;  %s829_s13 = smov %s634_s14 }
  0x4d   : > { %s830_s14 = smov %s754_s18  ;;  %s831_s15 = smov %s642_s16 }
  0x4e   : > { %s832_s16 = smov %s834_s5  ;;  %20 = sbr.rel (!%p18_p9) target bundleno = 8 (0x8), region = 88 }
  0x53   :  { %297 = vsyncpa [#allocation3], 1 }
  0x54   :  { %299 = vsyncpa [#allocation3 + $0x1], 1 }
  0x55   :  { %300 = vsyncpa [#allocation4], 1 }
  0x56   :  { %302 = vsyncpa [#allocation4 + $0x1], 1 }
  0x57   :  { %303 = vsyncpa [#allocation5], 1 }
  0x58   :  { %305 = vsyncpa [#allocation5 + $0x1], 1 }
  0x59   :  { %306 = vsyncpa [#allocation7], 1 }

</bundles_post_ra>
